<compile_context>
chip_gen: v6e
topology: v6e:2x2x1
jax: 0.10.0
libtpu: 0.0.40
codegen_flags: <defaults>
</compile_context>

<pallas_src>
import functools

import jax
import jax.numpy as jnp
from jax.experimental import pallas as pl
from jax.experimental.pallas import tpu as pltpu


def _spectral_mul_kernel(xr_ref, xi_ref, wr_ref, wi_ref, or_ref, oi_ref,
                         *, in_channels: int, unroll: int):
    """Complex contraction out[o,m] = sum_i x[i,m] * w[i,o,m] for one
    (slice, batch) tile, on split real/imag planes.

    xr/xi : (I, 1, M)   real / imag of truncated x_ft for one batch element
    wr/wi : (I, O, M)   real / imag of spectral weights for one slice
    or/oi : (O, M)      real / imag of the result tile
    """
    out_shape = or_ref.shape  # (O, M)

    def body(i, carry):
        acc_r, acc_i = carry
        xr_i = xr_ref[i]          # (1, M) — broadcast over the O sublanes
        xi_i = xi_ref[i]
        wr_i = wr_ref[i]          # (O, M)
        wi_i = wi_ref[i]
        # (a + ib)(c + id) = (ac - bd) + i(ad + bc)
        acc_r = acc_r + xr_i * wr_i - xi_i * wi_i
        acc_i = acc_i + xr_i * wi_i + xi_i * wr_i
        return acc_r, acc_i

    zeros = jnp.zeros(out_shape, jnp.float32)
    acc_r, acc_i = jax.lax.fori_loop(0, in_channels, body, (zeros, zeros),
                                     unroll=unroll)
    or_ref[...] = acc_r
    oi_ref[...] = acc_i


def spectral_contract(x_top, x_bot, w1, w2):
    """Fused Pallas complex einsum 'bixy,ioxy->boxy' for the top and bottom
    mode slices of x_ft.  Returns (top_out, bot_out), complex64 (B,O,m1,m2)."""
    B, I, m1, m2 = x_top.shape
    O = w1.shape[1]
    M_raw = m1 * m2
    M_pad = max(128, ((M_raw + 127) // 128) * 128)   # lane-dense last axis
    pad = M_pad - M_raw

    x_stack = jnp.stack([x_top, x_bot], axis=0)      # (2, B, I, m1, m2) c64
    w_stack = jnp.stack([w1, w2], axis=0)            # (2, I, O, m1, m2) c64

    def flat_pad(z, lead):
        z = z.reshape(lead + (M_raw,))
        if pad:
            z = jnp.pad(z, [(0, 0)] * len(lead) + [(0, pad)])
        return z.astype(jnp.float32)

    xr = flat_pad(jnp.real(x_stack), (2, B, I)).reshape(2, B, I, 1, M_pad)
    xi = flat_pad(jnp.imag(x_stack), (2, B, I)).reshape(2, B, I, 1, M_pad)
    wr = flat_pad(jnp.real(w_stack), (2, I, O))
    wi = flat_pad(jnp.imag(w_stack), (2, I, O))

    kernel = functools.partial(
        _spectral_mul_kernel, in_channels=I, unroll=(I if I <= 8 else 4))

    flops = 8 * 2 * B * I * O * M_raw                # complex multiply-add
    bytes_accessed = 4 * (xr.size + xi.size + wr.size + wi.size
                          + 2 * 2 * B * O * M_pad)
    cost = pl.CostEstimate(flops=flops, transcendentals=0,
                           bytes_accessed=bytes_accessed)

    out_r, out_i = pl.pallas_call(
        kernel,
        out_shape=(jax.ShapeDtypeStruct((2, B, O, M_pad), jnp.float32),
                   jax.ShapeDtypeStruct((2, B, O, M_pad), jnp.float32)),
        grid_spec=pltpu.PrefetchScalarGridSpec(
            num_scalar_prefetch=0,
            grid=(2, B),                             # (slice, batch)
            in_specs=[
                pl.BlockSpec((None, None, I, 1, M_pad),
                             lambda s, b: (s, b, 0, 0, 0)),
                pl.BlockSpec((None, None, I, 1, M_pad),
                             lambda s, b: (s, b, 0, 0, 0)),
                pl.BlockSpec((None, I, O, M_pad),
                             lambda s, b: (s, 0, 0, 0)),
                pl.BlockSpec((None, I, O, M_pad),
                             lambda s, b: (s, 0, 0, 0)),
            ],
            out_specs=(
                pl.BlockSpec((None, None, O, M_pad),
                             lambda s, b: (s, b, 0, 0)),
                pl.BlockSpec((None, None, O, M_pad),
                             lambda s, b: (s, b, 0, 0)),
            ),
        ),
        compiler_params=pltpu.CompilerParams(
            dimension_semantics=("parallel", "parallel"),
            vmem_limit_bytes=64 * 1024 * 1024,
        ),
        cost_estimate=cost,
    )(xr, xi, wr, wi)

    out = (out_r[..., :M_raw] + 1j * out_i[..., :M_raw]).astype(jnp.complex64)
    out = out.reshape(2, B, O, m1, m2)
    return out[0], out[1]


class SpectralConv2d:
    """JAX/Pallas port of the PyTorch SpectralConv2d module (NCHW float32)."""

    def __init__(self, in_channels, out_channels, modes1, modes2, key):
        self.in_channels = in_channels
        self.out_channels = out_channels
        self.modes1 = modes1
        self.modes2 = modes2
        scale = 1.0 / (in_channels * out_channels)
        k1r, k1i, k2r, k2i = jax.random.split(key, 4)
        shape = (in_channels, out_channels, modes1, modes2)
        # torch.rand(..., dtype=cfloat) draws uniform [0,1) for real and imag.
        self.weights1 = scale * (
            jax.random.uniform(k1r, shape, jnp.float32)
            + 1j * jax.random.uniform(k1i, shape, jnp.float32))
        self.weights2 = scale * (
            jax.random.uniform(k2r, shape, jnp.float32)
            + 1j * jax.random.uniform(k2i, shape, jnp.float32))

    def __call__(self, x):
        B, _, H, W = x.shape
        m1, m2 = self.modes1, self.modes2
        w_half = W // 2 + 1

        # TODO(synk): rfft2 / irfft2 have no Pallas equivalent; kept in plain JAX.
        x_ft = jnp.fft.rfft2(x)                      # (B, C_in, H, w_half) c64

        top, bot = spectral_contract(
            x_ft[:, :, :m1, :m2], x_ft[:, :, H - m1:, :m2],
            self.weights1, self.weights2)

        # Assemble out_ft by pad + concatenate (avoids the zeros + two-scatter
        # full-array HBM passes).  Assumes modes1 <= H // 2 (standard FNO).
        pad_w = ((0, 0), (0, 0), (0, 0), (0, w_half - m2))
        top_p = jnp.pad(top, pad_w)
        bot_p = jnp.pad(bot, pad_w)
        mid = jnp.zeros((B, self.out_channels, H - 2 * m1, w_half),
                        jnp.complex64)
        out_ft = jnp.concatenate([top_p, mid, bot_p], axis=2)

        return jnp.fft.irfft2(out_ft, s=(H, W))      # (B, C_out, H, W) f32


def _reference_forward(layer, x):
    """Pure-JAX reference (mirrors the PyTorch forward) for a sanity check."""
    B, _, H, W = x.shape
    m1, m2 = layer.modes1, layer.modes2
    x_ft = jnp.fft.rfft2(x)
    out_ft = jnp.zeros((B, layer.out_channels, H, W // 2 + 1), jnp.complex64)
    out_ft = out_ft.at[:, :, :m1, :m2].set(
        jnp.einsum('bixy,ioxy->boxy', x_ft[:, :, :m1, :m2], layer.weights1))
    out_ft = out_ft.at[:, :, H - m1:, :m2].set(
        jnp.einsum('bixy,ioxy->boxy', x_ft[:, :, -m1:, :m2], layer.weights2))
    return jnp.fft.irfft2(out_ft, s=(H, W))


if __name__ == "__main__":
    key = jax.random.PRNGKey(0)
    k_w, k_x = jax.random.split(key)

    B, C_IN, C_OUT, H, W = 2, 4, 4, 16, 16
    MODES1, MODES2 = 4, 4

    layer = SpectralConv2d(C_IN, C_OUT, MODES1, MODES2, k_w)
    x = jax.random.normal(k_x, (B, C_IN, H, W), jnp.float32)

    out = jax.block_until_ready(layer(x))
    ref = jax.block_until_ready(_reference_forward(layer, x))

    assert out.shape == (B, C_OUT, H, W)
    assert jnp.allclose(out, ref, atol=1e-5, rtol=1e-5)

    print("KERNEL_OK")
</pallas_src>

<mosaic_0001>
module attributes {stable_mosaic.version = 11 : i64} {
  func.func @_spectral_mul_kernel(%arg0: i32, %arg1: i32, %arg2: memref<1x1x4x1x128xf32, #tpu.memory_space<vmem>>, %arg3: memref<1x1x4x1x128xf32, #tpu.memory_space<vmem>>, %arg4: memref<1x4x4x128xf32, #tpu.memory_space<vmem>>, %arg5: memref<1x4x4x128xf32, #tpu.memory_space<vmem>>, %arg6: memref<1x1x4x128xf32, #tpu.memory_space<vmem>>, %arg7: memref<1x1x4x128xf32, #tpu.memory_space<vmem>>) attributes {dimension_semantics = [#tpu.dimension_semantics<parallel>, #tpu.dimension_semantics<parallel>], iteration_bounds = array<i64: 2, 2>, scalar_prefetch = 0 : i64, scratch_operands = 0 : i64, tpu.core_type = #tpu.core_type<tc>, window_params = [{transform_indices = @transform_0, window_bounds = array<i64: 1, 1, 4, 1, 128>}, {transform_indices = @transform_1, window_bounds = array<i64: 1, 1, 4, 1, 128>}, {transform_indices = @transform_2, window_bounds = array<i64: 1, 4, 4, 128>}, {transform_indices = @transform_3, window_bounds = array<i64: 1, 4, 4, 128>}, {transform_indices = @transform_4, window_bounds = array<i64: 1, 1, 4, 128>}, {transform_indices = @transform_5, window_bounds = array<i64: 1, 1, 4, 128>}]} {
    %cst = arith.constant 0.000000e+00 : f32
    %0 = vector.broadcast %cst : f32 to vector<4x128xf32>
    %c0_i32 = arith.constant 0 : i32
    %c0 = arith.constant 0 : index
    %c0_0 = arith.constant 0 : index
    %1 = arith.index_cast %c0_i32 : i32 to index
    %c0_1 = arith.constant 0 : index
    %c0_2 = arith.constant 0 : index
    %2 = vector.load %arg2[%c0, %c0_0, %1, %c0_1, %c0_2] : memref<1x1x4x1x128xf32, #tpu.memory_space<vmem>>, vector<1x1x1x1x128xf32>
    %3 = vector.shape_cast %2 : vector<1x1x1x1x128xf32> to vector<1x128xf32>
    %c0_3 = arith.constant 0 : index
    %c0_4 = arith.constant 0 : index
    %4 = arith.index_cast %c0_i32 : i32 to index
    %c0_5 = arith.constant 0 : index
    %c0_6 = arith.constant 0 : index
    %5 = vector.load %arg3[%c0_3, %c0_4, %4, %c0_5, %c0_6] : memref<1x1x4x1x128xf32, #tpu.memory_space<vmem>>, vector<1x1x1x1x128xf32>
    %6 = vector.shape_cast %5 : vector<1x1x1x1x128xf32> to vector<1x128xf32>
    %c0_7 = arith.constant 0 : index
    %7 = arith.index_cast %c0_i32 : i32 to index
    %c0_8 = arith.constant 0 : index
    %c0_9 = arith.constant 0 : index
    %8 = vector.load %arg4[%c0_7, %7, %c0_8, %c0_9] : memref<1x4x4x128xf32, #tpu.memory_space<vmem>>, vector<1x1x4x128xf32>
    %9 = vector.shape_cast %8 : vector<1x1x4x128xf32> to vector<4x128xf32>
    %c0_10 = arith.constant 0 : index
    %10 = arith.index_cast %c0_i32 : i32 to index
    %c0_11 = arith.constant 0 : index
    %c0_12 = arith.constant 0 : index
    %11 = vector.load %arg5[%c0_10, %10, %c0_11, %c0_12] : memref<1x4x4x128xf32, #tpu.memory_space<vmem>>, vector<1x1x4x128xf32>
    %12 = vector.shape_cast %11 : vector<1x1x4x128xf32> to vector<4x128xf32>
    %13 = vector.broadcast %3 : vector<1x128xf32> to vector<4x128xf32>
    %14 = arith.mulf %13, %9 : vector<4x128xf32>
    %15 = arith.addf %0, %14 : vector<4x128xf32>
    %16 = vector.broadcast %6 : vector<1x128xf32> to vector<4x128xf32>
    %17 = arith.mulf %16, %12 : vector<4x128xf32>
    %18 = arith.subf %15, %17 : vector<4x128xf32>
    %19 = vector.broadcast %3 : vector<1x128xf32> to vector<4x128xf32>
    %20 = arith.mulf %19, %12 : vector<4x128xf32>
    %21 = arith.addf %0, %20 : vector<4x128xf32>
    %22 = vector.broadcast %6 : vector<1x128xf32> to vector<4x128xf32>
    %23 = arith.mulf %22, %9 : vector<4x128xf32>
    %24 = arith.addf %21, %23 : vector<4x128xf32>
    %c1_i32 = arith.constant 1 : i32
    %c0_13 = arith.constant 0 : index
    %c0_14 = arith.constant 0 : index
    %25 = arith.index_cast %c1_i32 : i32 to index
    %c0_15 = arith.constant 0 : index
    %c0_16 = arith.constant 0 : index
    %26 = vector.load %arg2[%c0_13, %c0_14, %25, %c0_15, %c0_16] : memref<1x1x4x1x128xf32, #tpu.memory_space<vmem>>, vector<1x1x1x1x128xf32>
    %27 = vector.shape_cast %26 : vector<1x1x1x1x128xf32> to vector<1x128xf32>
    %c0_17 = arith.constant 0 : index
    %c0_18 = arith.constant 0 : index
    %28 = arith.index_cast %c1_i32 : i32 to index
    %c0_19 = arith.constant 0 : index
    %c0_20 = arith.constant 0 : index
    %29 = vector.load %arg3[%c0_17, %c0_18, %28, %c0_19, %c0_20] : memref<1x1x4x1x128xf32, #tpu.memory_space<vmem>>, vector<1x1x1x1x128xf32>
    %30 = vector.shape_cast %29 : vector<1x1x1x1x128xf32> to vector<1x128xf32>
    %c0_21 = arith.constant 0 : index
    %31 = arith.index_cast %c1_i32 : i32 to index
    %c0_22 = arith.constant 0 : index
    %c0_23 = arith.constant 0 : index
    %32 = vector.load %arg4[%c0_21, %31, %c0_22, %c0_23] : memref<1x4x4x128xf32, #tpu.memory_space<vmem>>, vector<1x1x4x128xf32>
    %33 = vector.shape_cast %32 : vector<1x1x4x128xf32> to vector<4x128xf32>
    %c0_24 = arith.constant 0 : index
    %34 = arith.index_cast %c1_i32 : i32 to index
    %c0_25 = arith.constant 0 : index
    %c0_26 = arith.constant 0 : index
    %35 = vector.load %arg5[%c0_24, %34, %c0_25, %c0_26] : memref<1x4x4x128xf32, #tpu.memory_space<vmem>>, vector<1x1x4x128xf32>
    %36 = vector.shape_cast %35 : vector<1x1x4x128xf32> to vector<4x128xf32>
    %37 = vector.broadcast %27 : vector<1x128xf32> to vector<4x128xf32>
    %38 = arith.mulf %37, %33 : vector<4x128xf32>
    %39 = arith.addf %18, %38 : vector<4x128xf32>
    %40 = vector.broadcast %30 : vector<1x128xf32> to vector<4x128xf32>
    %41 = arith.mulf %40, %36 : vector<4x128xf32>
    %42 = arith.subf %39, %41 : vector<4x128xf32>
    %43 = vector.broadcast %27 : vector<1x128xf32> to vector<4x128xf32>
    %44 = arith.mulf %43, %36 : vector<4x128xf32>
    %45 = arith.addf %24, %44 : vector<4x128xf32>
    %46 = vector.broadcast %30 : vector<1x128xf32> to vector<4x128xf32>
    %47 = arith.mulf %46, %33 : vector<4x128xf32>
    %48 = arith.addf %45, %47 : vector<4x128xf32>
    %c2_i32 = arith.constant 2 : i32
    %c0_27 = arith.constant 0 : index
    %c0_28 = arith.constant 0 : index
    %49 = arith.index_cast %c2_i32 : i32 to index
    %c0_29 = arith.constant 0 : index
    %c0_30 = arith.constant 0 : index
    %50 = vector.load %arg2[%c0_27, %c0_28, %49, %c0_29, %c0_30] : memref<1x1x4x1x128xf32, #tpu.memory_space<vmem>>, vector<1x1x1x1x128xf32>
    %51 = vector.shape_cast %50 : vector<1x1x1x1x128xf32> to vector<1x128xf32>
    %c0_31 = arith.constant 0 : index
    %c0_32 = arith.constant 0 : index
    %52 = arith.index_cast %c2_i32 : i32 to index
    %c0_33 = arith.constant 0 : index
    %c0_34 = arith.constant 0 : index
    %53 = vector.load %arg3[%c0_31, %c0_32, %52, %c0_33, %c0_34] : memref<1x1x4x1x128xf32, #tpu.memory_space<vmem>>, vector<1x1x1x1x128xf32>
    %54 = vector.shape_cast %53 : vector<1x1x1x1x128xf32> to vector<1x128xf32>
    %c0_35 = arith.constant 0 : index
    %55 = arith.index_cast %c2_i32 : i32 to index
    %c0_36 = arith.constant 0 : index
    %c0_37 = arith.constant 0 : index
    %56 = vector.load %arg4[%c0_35, %55, %c0_36, %c0_37] : memref<1x4x4x128xf32, #tpu.memory_space<vmem>>, vector<1x1x4x128xf32>
    %57 = vector.shape_cast %56 : vector<1x1x4x128xf32> to vector<4x128xf32>
    %c0_38 = arith.constant 0 : index
    %58 = arith.index_cast %c2_i32 : i32 to index
    %c0_39 = arith.constant 0 : index
    %c0_40 = arith.constant 0 : index
    %59 = vector.load %arg5[%c0_38, %58, %c0_39, %c0_40] : memref<1x4x4x128xf32, #tpu.memory_space<vmem>>, vector<1x1x4x128xf32>
    %60 = vector.shape_cast %59 : vector<1x1x4x128xf32> to vector<4x128xf32>
    %61 = vector.broadcast %51 : vector<1x128xf32> to vector<4x128xf32>
    %62 = arith.mulf %61, %57 : vector<4x128xf32>
    %63 = arith.addf %42, %62 : vector<4x128xf32>
    %64 = vector.broadcast %54 : vector<1x128xf32> to vector<4x128xf32>
    %65 = arith.mulf %64, %60 : vector<4x128xf32>
    %66 = arith.subf %63, %65 : vector<4x128xf32>
    %67 = vector.broadcast %51 : vector<1x128xf32> to vector<4x128xf32>
    %68 = arith.mulf %67, %60 : vector<4x128xf32>
    %69 = arith.addf %48, %68 : vector<4x128xf32>
    %70 = vector.broadcast %54 : vector<1x128xf32> to vector<4x128xf32>
    %71 = arith.mulf %70, %57 : vector<4x128xf32>
    %72 = arith.addf %69, %71 : vector<4x128xf32>
    %c3_i32 = arith.constant 3 : i32
    %c0_41 = arith.constant 0 : index
    %c0_42 = arith.constant 0 : index
    %73 = arith.index_cast %c3_i32 : i32 to index
    %c0_43 = arith.constant 0 : index
    %c0_44 = arith.constant 0 : index
    %74 = vector.load %arg2[%c0_41, %c0_42, %73, %c0_43, %c0_44] : memref<1x1x4x1x128xf32, #tpu.memory_space<vmem>>, vector<1x1x1x1x128xf32>
    %75 = vector.shape_cast %74 : vector<1x1x1x1x128xf32> to vector<1x128xf32>
    %c0_45 = arith.constant 0 : index
    %c0_46 = arith.constant 0 : index
    %76 = arith.index_cast %c3_i32 : i32 to index
    %c0_47 = arith.constant 0 : index
    %c0_48 = arith.constant 0 : index
    %77 = vector.load %arg3[%c0_45, %c0_46, %76, %c0_47, %c0_48] : memref<1x1x4x1x128xf32, #tpu.memory_space<vmem>>, vector<1x1x1x1x128xf32>
    %78 = vector.shape_cast %77 : vector<1x1x1x1x128xf32> to vector<1x128xf32>
    %c0_49 = arith.constant 0 : index
    %79 = arith.index_cast %c3_i32 : i32 to index
    %c0_50 = arith.constant 0 : index
    %c0_51 = arith.constant 0 : index
    %80 = vector.load %arg4[%c0_49, %79, %c0_50, %c0_51] : memref<1x4x4x128xf32, #tpu.memory_space<vmem>>, vector<1x1x4x128xf32>
    %81 = vector.shape_cast %80 : vector<1x1x4x128xf32> to vector<4x128xf32>
    %c0_52 = arith.constant 0 : index
    %82 = arith.index_cast %c3_i32 : i32 to index
    %c0_53 = arith.constant 0 : index
    %c0_54 = arith.constant 0 : index
    %83 = vector.load %arg5[%c0_52, %82, %c0_53, %c0_54] : memref<1x4x4x128xf32, #tpu.memory_space<vmem>>, vector<1x1x4x128xf32>
    %84 = vector.shape_cast %83 : vector<1x1x4x128xf32> to vector<4x128xf32>
    %85 = vector.broadcast %75 : vector<1x128xf32> to vector<4x128xf32>
    %86 = arith.mulf %85, %81 : vector<4x128xf32>
    %87 = arith.addf %66, %86 : vector<4x128xf32>
    %88 = vector.broadcast %78 : vector<1x128xf32> to vector<4x128xf32>
    %89 = arith.mulf %88, %84 : vector<4x128xf32>
    %90 = arith.subf %87, %89 : vector<4x128xf32>
    %91 = vector.broadcast %75 : vector<1x128xf32> to vector<4x128xf32>
    %92 = arith.mulf %91, %84 : vector<4x128xf32>
    %93 = arith.addf %72, %92 : vector<4x128xf32>
    %94 = vector.broadcast %78 : vector<1x128xf32> to vector<4x128xf32>
    %95 = arith.mulf %94, %81 : vector<4x128xf32>
    %96 = arith.addf %93, %95 : vector<4x128xf32>
    %c4_i32 = arith.constant 4 : i32
    %c0_55 = arith.constant 0 : index
    %c0_56 = arith.constant 0 : index
    %c0_57 = arith.constant 0 : index
    %c0_58 = arith.constant 0 : index
    %97 = vector.load %arg6[%c0_55, %c0_56, %c0_57, %c0_58] : memref<1x1x4x128xf32, #tpu.memory_space<vmem>>, vector<1x1x4x128xf32>
    %98 = vector.shape_cast %97 : vector<1x1x4x128xf32> to vector<4x128xf32>
    %99 = vector.shape_cast %90 : vector<4x128xf32> to vector<1x1x4x128xf32>
    tpu.vector_store %arg6[%c0_55, %c0_56, %c0_57, %c0_58], %99 {strides = array<i32>} : memref<1x1x4x128xf32, #tpu.memory_space<vmem>>, vector<1x1x4x128xf32>,
    %c0_59 = arith.constant 0 : index
    %c0_60 = arith.constant 0 : index
    %c0_61 = arith.constant 0 : index
    %c0_62 = arith.constant 0 : index
    %100 = vector.load %arg7[%c0_59, %c0_60, %c0_61, %c0_62] : memref<1x1x4x128xf32, #tpu.memory_space<vmem>>, vector<1x1x4x128xf32>
    %101 = vector.shape_cast %100 : vector<1x1x4x128xf32> to vector<4x128xf32>
    %102 = vector.shape_cast %96 : vector<4x128xf32> to vector<1x1x4x128xf32>
    tpu.vector_store %arg7[%c0_59, %c0_60, %c0_61, %c0_62], %102 {strides = array<i32>} : memref<1x1x4x128xf32, #tpu.memory_space<vmem>>, vector<1x1x4x128xf32>,
    return
  }
  func.func @transform_0(%arg0: i32, %arg1: i32) -> (i32, i32, i32, i32, i32) {
    %c0_i32 = arith.constant 0 : i32
    %c0_i32_0 = arith.constant 0 : i32
    %c0_i32_1 = arith.constant 0 : i32
    %c0_i32_2 = arith.constant 0 : i32
    return %arg0, %arg1, %c0_i32, %c0_i32_0, %c0_i32_1 : i32, i32, i32, i32, i32
  }
  func.func @transform_1(%arg0: i32, %arg1: i32) -> (i32, i32, i32, i32, i32) {
    %c0_i32 = arith.constant 0 : i32
    %c0_i32_0 = arith.constant 0 : i32
    %c0_i32_1 = arith.constant 0 : i32
    %c0_i32_2 = arith.constant 0 : i32
    return %arg0, %arg1, %c0_i32, %c0_i32_0, %c0_i32_1 : i32, i32, i32, i32, i32
  }
  func.func @transform_2(%arg0: i32, %arg1: i32) -> (i32, i32, i32, i32) {
    %c0_i32 = arith.constant 0 : i32
    %c0_i32_0 = arith.constant 0 : i32
    %c0_i32_1 = arith.constant 0 : i32
    %c0_i32_2 = arith.constant 0 : i32
    return %arg0, %c0_i32, %c0_i32_0, %c0_i32_1 : i32, i32, i32, i32
  }
  func.func @transform_3(%arg0: i32, %arg1: i32) -> (i32, i32, i32, i32) {
    %c0_i32 = arith.constant 0 : i32
    %c0_i32_0 = arith.constant 0 : i32
    %c0_i32_1 = arith.constant 0 : i32
    %c0_i32_2 = arith.constant 0 : i32
    return %arg0, %c0_i32, %c0_i32_0, %c0_i32_1 : i32, i32, i32, i32
  }
  func.func @transform_4(%arg0: i32, %arg1: i32) -> (i32, i32, i32, i32) {
    %c0_i32 = arith.constant 0 : i32
    %c0_i32_0 = arith.constant 0 : i32
    %c0_i32_1 = arith.constant 0 : i32
    return %arg0, %arg1, %c0_i32, %c0_i32_0 : i32, i32, i32, i32
  }
  func.func @transform_5(%arg0: i32, %arg1: i32) -> (i32, i32, i32, i32) {
    %c0_i32 = arith.constant 0 : i32
    %c0_i32_0 = arith.constant 0 : i32
    %c0_i32_1 = arith.constant 0 : i32
    return %arg0, %arg1, %c0_i32, %c0_i32_0 : i32, i32, i32, i32
  }
}

</mosaic_0001>

<bundles_post_ra>
// kernel: tpu_custom_call.1
= control target key start
LH: loop header
LB: loop body
LE: loop exit
PB: predicated region body
PF: predicated region fallthrough
CT: control target
= control target key end

     0   :  { %s1594_s0 = inlined_call_operand.hbm [shape: f32[2,2,4,1,128], index: 0, kind: input, shape index: {}]   ;;  %s1595_s1 = inlined_call_operand.hbm [shape: f32[2,2,4,1,128], index: 1, kind: input, shape index: {}]   ;;  %s1596_s2 = inlined_call_operand.hbm [shape: f32[2,4,4,128], index: 2, kind: input, shape index: {}]   ;;  %s1597_s3 = inlined_call_operand.hbm [shape: f32[2,4,4,128], index: 3, kind: input, shape index: {}]   ;;  %s1598_s4 = inlined_call_operand.hbm [shape: f32[2,2,4,128], index: 4, kind: output, shape index: {0}]   ;;  %s1599_s5 = inlined_call_operand.hbm [shape: f32[2,2,4,128], index: 5, kind: output, shape index: {1}]  }
   0x1   :  { %1615 = sst [smem:[#allocation29_spill]] %s1595_s1 }
   0x2   :  { %1616 = sst [smem:[#allocation30_spill]] %s1598_s4 }
   0x3   :  { %1617 = sst [smem:[#allocation31_spill]] %s1599_s5 }
   0x4   :  { %11 = vsyncpa [#allocation3], 0 }
   0x5   :  { %13 = vsyncpa [#allocation3 + $0x1], 0 }
   0x6   :  { %14 = vsyncpa [#allocation6], 0 }
   0x7   :  { %16 = vsyncpa [#allocation6 + $0x1], 0 }
   0x8   :  { %17 = vsyncpa [#allocation9], 0 }
   0x9   :  { %19 = vsyncpa [#allocation9 + $0x1], 0 }
   0xa   :  { %20 = vsyncpa [#allocation4], 0 }
   0xb   :  { %22 = vsyncpa [#allocation4 + $0x1], 0 }
   0xc   :  { %23 = vsyncpa [#allocation12], 0 }
   0xd   :  { %25 = vsyncpa [#allocation12 + $0x1], 0  ;;  %s1227_s18 = smov 0   ;;  %s1229_s19 = smov 0  }
   0xe   :  { %s1231_s20 = smov 0   ;;  %s1233_s21 = smov 0  }
   0xf   :  { %s1235_s22 = smov 0   ;;  %s1237_s23 = smov 0  }
  0x10   :  { %s1239_s24 = smov 0   ;;  %s1241_s25 = smov 0  }
  0x11   :  { %s1243_s26 = smov 0   ;;  %s1245_s27 = smov 0  }
  0x12   :  { %s1247_s28 = smov 0  }
  0x13 LB: > { %1618 = sst [smem:[#allocation19_spill]] %s1157_s21  ;;  %s1283_s29 = sadd.s32 4294967295, %s1185_s28   ;;  %s1185_s28 = sphi %s1247_s28, %s31_s28   ;;  %s1181_s27 = sphi %s1245_s27, %s1662_s27   ;;  %s1177_s26 = sphi %s1243_s26, %s1653_s26   ;;  %s1173_s25 = sphi %s1241_s25, %s1661_s25   ;;  %s1169_s24 = sphi %s1239_s24, %s1652_s24   ;;  %s1165_s23 = sphi %s1237_s23, %s1660_s23   ;;  %s1161_s22 = sphi %s1235_s22, %s1659_s22   ;;  %s1157_s21 = sphi %s1233_s21, %s1658_s21   ;;  %s1153_s20 = sphi %s1231_s20, %s1657_s20   ;;  %s1149_s19 = sphi %s1229_s19, %s1656_s19   ;;  %s1145_s18 = sphi %s1227_s18, %s1655_s18  }
  0x14   : > { %1619 = sst [smem:[#allocation20_spill]] %s1169_s24  ;;  %s731_s30 = sadd.s32 4294967294, %s1185_s28  }
  0x15   : > { %1620 = sst [smem:[#allocation21_spill]] %s1173_s25  ;;  %s40_s6 = sadd.s32 1, %s1177_s26 }
  0x16   : > { %1621 = sst [smem:[#allocation22_spill]] %s1177_s26  ;;  %s43_s7 = sadd.s32 1, %s1181_s27 }
  0x17   : > { %p41_p0 = scmp.ge.s32.totalorder %s40_s6, 2  ;;  %s52_s8 = sadd.s32 1, %s1165_s23 }
  0x18   : > { %p59_p1 = scmp.ne.s32.totalorder %s1165_s23, %s1161_s22  ;;  %p1610_p2 = scmp.eq.s32.totalorder %s1185_s28, 0 }
  0x19   : > { %s1664_s6 = smov (%p41_p0, %s40_s6), 0  ;;  %s1666_s7 = smov (!%p41_p0, %s43_s7), %s1181_s27 }
  0x1a   : > { %1622 = sst [smem:[#allocation23_spill]] %s1664_s6  ;;  %s48_s9 = ssub.s32 %s1177_s26, %s1664_s6 }
  0x1b   : > { %p1299_p3 = por %p1610_p2, %p59_p1  ;;  %p45_p4 = scmp.ge.s32.totalorder %s1666_s7, 2 }
  0x1c   : > { %p65_p5 = scmp.ne.s32.totalorder %s1161_s22, %s1157_s21  ;;  %p1609_p6 = scmp.eq.s32.totalorder %s1283_s29, 0 }
  0x1d   : > { %p171_p7 = scmp.eq.s32.totalorder %s1283_s29, 3  ;;  %s1668_s7 = smov (%p45_p4, %s1666_s7), 0 }
  0x1e   : > { %1624 = sst [smem:[#allocation24_spill]] %s1668_s7  ;;  %p1311_p8 = por %p1609_p6, %p65_p5 }
  0x1f   : > { %p1315_p9 = por %p171_p7, %p59_p1  ;;  %s1321_s13 = ssub.s32 %s1181_s27, %s1668_s7 }
  0x20   : > { %s1625_s11 = scalar_select %p1311_p8, 1, 0 }
  0x21   : > { %s1627_s12 = scalar_select %p1315_p9, 1, 0 }
  0x22   : > { %1626 = sst [smem:[#allocation25_spill]] %s1625_s11  ;;  %p177_p10 = scmp.eq.s32.totalorder %s731_s30, 3 }
  0x23   : > { %1628 = sst [smem:[#allocation26_spill]] %s1627_s12  ;;  %s49_s14 = sor.u32 %s48_s9, %s1321_s13 }
  0x24   : > { %p50_p12 = scmp.eq.s32.totalorder %s49_s14, 0  ;;  %p1325_p13 = por %p177_p10, %p65_p5 }
  0x25   : > { %p1608_p0 = scmp.lt.s32.totalorder %s1185_s28, 4  ;;  %s1604_s17 = sand.u32 1, %s1165_s23  }
  0x26   : > { %s1629_s15 = scalar_select %p1325_p13, 1, 0 }
  0x27   : > { %s1331_s16 = scalar_select %p50_p12, %s1165_s23, %s52_s8  }
  0x28   : > { %1630 = sst [smem:[#allocation27_spill]] %s1629_s15  ;;  %s735_s6 = sshll.u32 %s1177_s26, 2 }
  0x29   : > { %1631 = sst [smem:[#allocation28_spill]] %s1331_s16  ;;  %s1337_s7 = sshll.u32 %s1604_s17, 2 }
  0x2a   : > { %s736_s21 = sshll.u32 %s1181_s27, 3  ;;  %p1346_p1 = pnand %p1608_p0, %p1299_p3 }
  0x2b   : > { %s1340_s30 = sadd.s32 %s736_s21, %s735_s6  ;;  %s248_s14 = sand.u32 1, %s1185_s28  }
  0x2c   : > { %s737_s8 = sshll.u32 %s1340_s30, 4  ;;  %s1633_s1 = sld [smem:[#allocation29_spill]] }
  0x2d   : > { %s252_s15 = scalar_lea.vmem [#allocation5], %s1337_s7  ;;  %p748_p4 = scmp.ge.s32.totalorder %s1185_s28, 1 }
  0x2e   : > { %s261_s21 = sshll.u32 %s252_s15, 4  ;;  %p311_p5 = scmp.lt.s32.totalorder %s1185_s28, 5  ;;  %s262_s21 = int_to_ptr.vmem [resolvable:$true] %s261_s21 }
  0x2f   : > { %s1360_s6 = scalar_lea.sflag [#allocation6], %s248_s14  ;;  %p913_p3 = pneg %p1346_p1 }
  0x30   : > { %s924_s10 = scalar_lea.vmem %s262_s21, 64  ;;  %s1187_s5 = smov [#allocation5]  }
  0x31   : > { %p925_p7 = scmp.ne.s32.totalorder %s262_s21, %s924_s10  ;;  %s929_s4 = sshll.u32 %s1187_s5, 4  ;;  %s930_s4 = int_to_ptr.vmem [resolvable:$false] %s929_s4 }
  0x32   : > { %s260_s16 = scalar_lea.hbm %s1633_s1, %s737_s8  ;;  %s931_s26 = scalar_lea.vmem %s930_s4, 128 }
  0x33   : > { %p927_p10 = pnand %p925_p7, %p913_p3  ;;  %p932_p0 = scmp.lt.s32.totalorder %s262_s21, %s930_s4 }
  0x34   : > { %p933_p6 = scmp.lt.s32.totalorder %s931_s26, %s924_s10 }
  0x35   : > { %p928_p12 = pneg %p927_p10 }
  0x36   : > { %p934_p2 = por %p933_p6, %p932_p0 }
  0x38   : > { %p935_p11 = pnand %p934_p2, %p928_p12 }
  0x3a   : > { %938 = shalt.err (!%p935_p11)
}
  0x3b   : > { %s1188_s15 = smov 16   ;;  %s1189_s17 = smov 1  }
  0x3c   : > { %803 = dma.hbm_to_vmem [thread:$0]  (!%p1346_p1), %s260_s16, 64, %s262_s21, %s1360_s6, %s1188_s15, %s1188_s15, %s1189_s17  }
  0x3d   : > { %p1374_p7 = pnand %p748_p4, %p311_p5  ;;  %s237_s10 = scalar_lea.hbm %s1594_s0, %s737_s8 }
  0x3e   : > { %s229_s26 = scalar_lea.vmem [#allocation2], %s1337_s7  ;;  %s1635_s12 = sand.u32 1, %s1165_s23  }
  0x3f   : > { %s238_s1 = sshll.u32 %s229_s26, 4  ;;  %s226_s24 = scalar_lea.sflag [#allocation3], %s1635_s12  ;;  %s239_s1 = int_to_ptr.vmem [resolvable:$true] %s238_s1 }
  0x40   : > { %s952_s25 = scalar_lea.vmem %s239_s1, 64  ;;  %s1190_s16 = smov [#allocation2]  }
  0x41   : > { %p953_p2 = scmp.ne.s32.totalorder %s239_s1, %s952_s25  ;;  %s957_s21 = sshll.u32 %s1190_s16, 4  ;;  %s958_s21 = int_to_ptr.vmem [resolvable:$false] %s957_s21 }
  0x42   : > { %s959_s11 = scalar_lea.vmem %s958_s21, 128  ;;  %p960_p0 = scmp.lt.s32.totalorder %s239_s1, %s958_s21 }
  0x43   : > { %p955_p6 = pnand %p953_p2, %p913_p3  ;;  %p961_p4 = scmp.lt.s32.totalorder %s959_s11, %s952_s25 }
  0x45   : > { %p956_p11 = pneg %p955_p6  ;;  %p962_p5 = por %p961_p4, %p960_p0 }
  0x47   : > { %p963_p10 = pnand %p962_p5, %p956_p11 }
  0x49   : > { %966 = shalt.err (!%p963_p10)
}
  0x4a   : > { %800 = dma.hbm_to_vmem [thread:$0]  (!%p1346_p1), %s237_s10, 64, %s239_s1, %s226_s24, %s1188_s15, %s1188_s15, %s1189_s17  }
  0x4b   : > { %s106_s25 = sadd.s32 1, %s1153_s20  ;;  %p113_p3 = scmp.ne.s32.totalorder %s1153_s20, %s1149_s19 }
  0x4c   : > { %p1636_p12 = scmp.eq.s32.totalorder %s1321_s13, 0  ;;  %p1637_p2 = scmp.eq.s32.totalorder %s1185_s28, 0 }
  0x4d   : > { %p119_p11 = scmp.ne.s32.totalorder %s1149_s19, %s1145_s18  ;;  %s273_s11 = sand.u32 1, %s1153_s20  }
  0x4e   : > { %s1397_s7 = scalar_select %p1636_p12, %s1153_s20, %s106_s25  }
  0x4f   : > { %p115_p6 = por %p113_p3, %p1637_p2  ;;  %s783_s12 = sshll.u32 %s1181_s27, 8 }
  0x50   : > { %p1638_p0 = scmp.eq.s32.totalorder %s1283_s29, 0  ;;  %s742_s9 = sshll.u32 %s273_s11, 4 }
  0x51   : > { %s281_s24 = scalar_lea.hbm %s1596_s2, %s783_s12  ;;  %s275_s13 = scalar_lea.vmem [#allocation7], %s742_s9 }
  0x52   : > { %p1407_p4 = por %p119_p11, %p1638_p0  ;;  %s282_s15 = sshll.u32 %s275_s13, 4  ;;  %s283_s15 = int_to_ptr.vmem [resolvable:$true] %s282_s15 }
  0x53   : > { %p1640_p1 = scmp.lt.s32.totalorder %s1185_s28, 4  ;;  %s980_s18 = scalar_lea.vmem %s283_s15, 256 }
  0x54   : > { %p981_p3 = scmp.ne.s32.totalorder %s283_s15, %s980_s18  ;;  %s1191_s5 = smov [#allocation7]  }
  0x55   : > { %p1420_p5 = pnand %p1640_p1, %p115_p6  ;;  %s985_s14 = sshll.u32 %s1191_s5, 4  ;;  %s986_s14 = int_to_ptr.vmem [resolvable:$false] %s985_s14 }
  0x56   : > { %s987_s10 = scalar_lea.vmem %s986_s14, 512  ;;  %p988_p11 = scmp.lt.s32.totalorder %s283_s15, %s986_s14 }
  0x57   : > { %p969_p10 = pneg %p1420_p5  ;;  %p989_p6 = scmp.lt.s32.totalorder %s987_s10, %s980_s18 }
  0x59   : > { %p983_p12 = pnand %p981_p3, %p969_p10  ;;  %p990_p0 = por %p989_p6, %p988_p11 }
  0x5b   : > { %p984_p2 = pneg %p983_p12 }
  0x5d   : > { %p991_p1 = pnand %p990_p0, %p984_p2 }
  0x5f   : > { %994 = shalt.err (!%p991_p1)
}
  0x60   : > { %s1192_s26 = smov 64   ;;  %s1193_s16 = smov 4  }
  0x61   : > { %806 = dma.hbm_to_vmem [thread:$0]  (!%p1420_p5), %s281_s24, 256, %s283_s15, %s1360_s6, %s1192_s26, %s1192_s26, %s1193_s16  }
  0x62   : > { %s302_s8 = scalar_lea.hbm %s1597_s3, %s783_s12  ;;  %s296_s1 = scalar_lea.vmem [#allocation8], %s742_s9 }
  0x63   : > { %s303_s13 = sshll.u32 %s296_s1, 4  ;;  %s293_s18 = scalar_lea.sflag [#allocation9], %s273_s11  ;;  %s304_s13 = int_to_ptr.vmem [resolvable:$true] %s303_s13 }
  0x64   : > { %s1008_s5 = scalar_lea.vmem %s304_s13, 256  ;;  %s1194_s14 = smov [#allocation8]  }
  0x65   : > { %p1009_p3 = scmp.ne.s32.totalorder %s304_s13, %s1008_s5  ;;  %s1013_s10 = sshll.u32 %s1194_s14, 4  ;;  %s1014_s10 = int_to_ptr.vmem [resolvable:$false] %s1013_s10 }
  0x66   : > { %s1015_s6 = scalar_lea.vmem %s1014_s10, 512  ;;  %p1016_p11 = scmp.lt.s32.totalorder %s304_s13, %s1014_s10 }
  0x67   : > { %p1011_p12 = pnand %p1009_p3, %p969_p10  ;;  %p1017_p6 = scmp.lt.s32.totalorder %s1015_s6, %s1008_s5 }
  0x69   : > { %p1012_p2 = pneg %p1011_p12  ;;  %p1018_p0 = por %p1017_p6, %p1016_p11 }
  0x6b   : > { %p1019_p1 = pnand %p1018_p0, %p1012_p2 }
  0x6d   : > { %1022 = shalt.err (!%p1019_p1)
}
  0x6e   : > { %809 = dma.hbm_to_vmem [thread:$0]  (!%p1420_p5), %s302_s8, 256, %s304_s13, %s293_s18, %s1192_s26, %s1192_s26, %s1193_s16  }
  0x6f   : > { %315 = sbr.rel (%p1374_p7) target bundleno = 182 (0xb6), region = 36  ;;  %s1447_s12 = sand.u32 (!%p1374_p7), 1, %s1161_s22  }
  0x70   : > { %s1450_s9 = sshll.u32 (!%p1374_p7), %s1447_s12, 2  ;;  %s318_s24 = scalar_lea.sflag (!%p1374_p7), [#allocation3], %s1447_s12 }
  0x71   : > { %s1454_s15 = scalar_lea.vmem (!%p1374_p7), [#allocation2], %s1450_s9 }
  0x74   : > { %1120 = dma.done.wait (%p1311_p8), %s318_s24, 64  }
  0x75   : > { %1122 = vsyncadd (%p1311_p8), %s318_s24, 4294967232  ;;  %s326_s4 = sand.u32 1, %s1283_s29   ;;  %s1462_s26 = scalar_lea.vmem [#allocation5], %s1450_s9 }
  0x76   : > { %s327_s17 = scalar_lea.sflag [#allocation6], %s326_s4 }
  0x77   : > { %1124 = dma.done.wait (%p1311_p8), %s327_s17, 64  }
  0x78   : > { %1126 = vsyncadd (%p1311_p8), %s327_s17, 4294967232  ;;  %s337_s16 = sand.u32 1, %s1149_s19  }
  0x79   : > { %s751_s21 = sshll.u32 %s337_s16, 4 }
  0x7a   : > { %s1469_s25 = scalar_lea.vmem [#allocation7], %s751_s21 }
  0x7b   : > { %1128 = dma.done.wait (%p1407_p4), %s327_s17, 256  }
  0x7c   : > { %1130 = vsyncadd (%p1407_p4), %s327_s17, 4294967040  ;;  %s345_s29 = scalar_lea.sflag [#allocation9], %s337_s16  ;;  %s1475_s8 = scalar_lea.vmem [#allocation8], %s751_s21 }
  0x7d   : > { %1132 = dma.done.wait (%p1407_p4), %s345_s29, 256  }
  0x7e   : > { %1134 = vsyncadd (%p1407_p4), %s345_s29, 4294967040  ;;  %v755_v0 = vld [vmem:[%s1454_s15] ss:$0 sm:$0xff]  ;;  %v756_v1 = vld [vmem:[%s1462_s26] ss:$0 sm:$0xff]  ;;  %s1643_s30 = sld [smem:[#allocation21_spill]] }
  0x7f   : > { %v397_v2 = vld [vmem:[%s1469_s25] sm:$0xf]  ;;  %v761_v5 = vld [vmem:[%s1454_s15 + $0x1] ss:$0 sm:$0xff]  ;;  %v762_v6 = vld [vmem:[%s1462_s26 + $0x1] ss:$0 sm:$0xff] }
  0x80   : > { %v398_v3 = vld [vmem:[%s1475_s8] sm:$0xf]  ;;  %v405_v4 = vmul.f32 %v755_v0, %v397_v2  ;;  %v417_v7 = vmul.f32 %v756_v1, %v397_v2  ;;  %v759_v9 = vld [vmem:[%s1469_s25 + $0x4] sm:$0xf]  ;;  %v765_v14 = vld [vmem:[%s1469_s25 + $0x8] sm:$0xf] }
  0x81   : > { %v413_v8 = vmul.f32 %v756_v1, %v398_v3  ;;  %v760_v10 = vld [vmem:[%s1475_s8 + $0x4] sm:$0xf]  ;;  %v415_v11 = vmul.f32 %v755_v0, %v398_v3  ;;  %v433_v12 = vmul.f32 %v761_v5, %v759_v9  ;;  %v766_v15 = vld [vmem:[%s1475_s8 + $0x8] sm:$0xf]  ;;  %v445_v20 = vmul.f32 %v762_v6, %v759_v9  ;;  %v768_v21 = vld [vmem:[%s1462_s26 + $0x2] ss:$0 sm:$0xff] }
  0x82   : > { %v767_v13 = vld [vmem:[%s1454_s15 + $0x2] ss:$0 sm:$0xff]  ;;  %v443_v16 = vmul.f32 %v761_v5, %v760_v10  ;;  %v441_v18 = vmul.f32 %v762_v6, %v760_v10  ;;  %s1644_s1 = sld [smem:[#allocation20_spill]]  ;;  %v773_v26 = vld [vmem:[%s1454_s15 + $0x3] ss:$0 sm:$0xff]  ;;  %v469_v30 = vmul.f32 %v768_v21, %v766_v15  ;;  %v473_v32 = vmul.f32 %v768_v21, %v765_v14  ;;  %s387_s5 = scalar_lea.vmem [#allocation10], %s1450_s9 }
  0x83   : > { %v414_v17 = vsub.f32 %v405_v4, %v413_v8  ;;  %v418_v19 = vadd.f32 %v417_v7, %v415_v11  ;;  %v461_v23 = vmul.f32 %v767_v13, %v765_v14  ;;  %v471_v25 = vmul.f32 %v767_v13, %v766_v15  ;;  %v771_v27 = vld [vmem:[%s1469_s25 + $0xc] sm:$0xf]  ;;  %s526_s14 = sshll.u32 %s387_s5, 4  ;;  %s394_s10 = scalar_lea.vmem [#allocation11], %s1450_s9  ;;  %s1501_s14 = int_to_ptr.vmem [resolvable:$true] %s526_s14 }
  0x84   : > { %s777_s13 = sshll.u32 %s1643_s30, 1  ;;  %v772_v28 = vld [vmem:[%s1475_s8 + $0xc] sm:$0xf]  ;;  %v489_v35 = vmul.f32 %v773_v26, %v771_v27  ;;  %s541_s11 = sshll.u32 %s394_s10, 4  ;;  %s1503_s11 = int_to_ptr.vmem [resolvable:$true] %s541_s11 }
  0x85   : > { %v434_v22 = vadd.f32 %v433_v12, %v414_v17  ;;  %v444_v24 = vadd.f32 %v443_v16, %v418_v19  ;;  %v774_v33 = vld [vmem:[%s1462_s26 + $0x3] ss:$0 sm:$0xff]  ;;  %v499_v37 = vmul.f32 %v773_v26, %v772_v28  ;;  %s1646_s17 = sld [smem:[#allocation30_spill]]  ;;  %s506_s8 = scalar_lea.sflag [#allocation4], %s1447_s12 }
  0x86   : > { %v497_v39 = vmul.f32 %v774_v33, %v772_v28  ;;  %v501_v41 = vmul.f32 %v774_v33, %v771_v27  ;;  %s1647_s21 = sld [smem:[#allocation31_spill]]  ;;  %s1023_s30 = scalar_lea.vmem %s1501_s14, 64 }
  0x87   : > { %v442_v29 = vsub.f32 %v434_v22, %v441_v18  ;;  %v446_v31 = vadd.f32 %v445_v20, %v444_v24  ;;  %p1024_p8 = scmp.ne.s32.totalorder %s1501_s14, %s1023_s30 }
  0x88   : > { %s522_s18 = sadd.s32 %s1644_s1, %s777_s13  ;;  %s1195_s1 = smov [#allocation10]  }
  0x89   : > { %v462_v34 = vadd.f32 %v461_v23, %v442_v29  ;;  %v472_v36 = vadd.f32 %v471_v25, %v446_v31  ;;  %s778_s24 = sshll.u32 %s522_s18, 6  ;;  %p1025_p7 = pnand %p1024_p8, %p1315_p9 }
  0x8a   : > { %s1027_s13 = sshll.u32 %s1195_s1, 4  ;;  %s1028_s13 = int_to_ptr.vmem [resolvable:$false] %s1027_s13 }
  0x8b   : > { %v470_v38 = vsub.f32 %v462_v34, %v469_v30  ;;  %v474_v40 = vadd.f32 %v473_v32, %v472_v36  ;;  %s1508_s26 = scalar_lea.hbm %s1646_s17, %s778_s24  ;;  %p1026_p4 = pneg %p1025_p7 }
  0x8c   : > { %s1648_s29 = smov %s1647_s21  ;;  %s1513_s25 = scalar_lea.hbm %s1647_s21, %s778_s24 }
  0x8d   : > { %v490_v42 = vadd.f32 %v489_v35, %v470_v38  ;;  %v500_v43 = vadd.f32 %v499_v37, %v474_v40  ;;  %s1029_s18 = scalar_lea.vmem %s1028_s13, 128  ;;  %p1030_p5 = scmp.lt.s32.totalorder %s1501_s14, %s1028_s13 }
  0x8e   : > { %p1031_p10 = scmp.lt.s32.totalorder %s1029_s18, %s1023_s30 }
  0x8f   : > { %v498_v44 = vsub.f32 %v490_v42, %v497_v39  ;;  %v502_v45 = vadd.f32 %v501_v41, %v500_v43 }
  0x90   : > { %p1032_p3 = por %p1031_p10, %p1030_p5 }
  0x91   : > { %503 = vst [vmem:[%s387_s5] sm:$0xf] %v498_v44  ;;  %504 = vst [vmem:[%s394_s10] sm:$0xf] %v502_v45 }
  0x92   : > { %p1033_p12 = pnand %p1032_p3, %p1026_p4 }
  0x94   : > { %1036 = shalt.err (!%p1033_p12)
}
  0x95   : > { %s1037_s5 = scalar_lea.hbm %s1508_s26, 64  ;;  %s1041_s15 = scalar_lea.hbm %s1646_s17, 256 }
  0x96   : > { %p1038_p2 = scmp.ne.s32.totalorder %s1508_s26, %s1037_s5  ;;  %p1042_p0 = scmp.lt.s32.totalorder %s1508_s26, %s1646_s17 }
  0x97   : > { %p1043_p1 = scmp.lt.s32.totalorder %s1041_s15, %s1037_s5 }
  0x98   : > { %p1039_p11 = pnand %p1038_p2, %p1315_p9 }
  0x99   : > { %p1044_p8 = por %p1043_p1, %p1042_p0 }
  0x9a   : > { %p1040_p6 = pneg %p1039_p11 }
  0x9c   : > { %p1045_p7 = pnand %p1044_p8, %p1040_p6 }
  0x9e   : > { %1048 = shalt.err (!%p1045_p7)
}
  0x9f   : > { %793 = dma.vmem_to_hbm [thread:$0]  (%p1315_p9), %s1501_s14, 64, %s1508_s26, %s506_s8  }
  0xa0   : > { %s511_s16 = scalar_lea.sflag [#allocation12], %s1447_s12  ;;  %s1049_s21 = scalar_lea.vmem %s1503_s11, 64 }
  0xa1   : > { %p1050_p4 = scmp.ne.s32.totalorder %s1503_s11, %s1049_s21  ;;  %s1196_s30 = smov [#allocation11]  }
  0xa2   : > { %s1053_s1 = sshll.u32 %s1196_s30, 4  ;;  %s1054_s1 = int_to_ptr.vmem [resolvable:$false] %s1053_s1 }
  0xa3   : > { %p1051_p5 = pnand %p1050_p4, %p1315_p9  ;;  %s1055_s13 = scalar_lea.vmem %s1054_s1, 128 }
  0xa4   : > { %p1056_p3 = scmp.lt.s32.totalorder %s1503_s11, %s1054_s1  ;;  %p1057_p12 = scmp.lt.s32.totalorder %s1055_s13, %s1049_s21 }
  0xa5   : > { %p1052_p10 = pneg %p1051_p5 }
  0xa6   : > { %p1058_p2 = por %p1057_p12, %p1056_p3 }
  0xa8   : > { %p1059_p11 = pnand %p1058_p2, %p1052_p10 }
  0xaa   : > { %1062 = shalt.err (!%p1059_p11)
}
  0xab   : > { %s1063_s14 = scalar_lea.hbm %s1513_s25, 64  ;;  %s1067_s8 = scalar_lea.hbm %s1648_s29, 256 }
  0xac   : > { %p1064_p6 = scmp.ne.s32.totalorder %s1513_s25, %s1063_s14  ;;  %p1068_p8 = scmp.lt.s32.totalorder %s1513_s25, %s1648_s29 }
  0xad   : > { %p1069_p7 = scmp.lt.s32.totalorder %s1067_s8, %s1063_s14 }
  0xae   : > { %p1065_p0 = pnand %p1064_p6, %p1315_p9 }
  0xaf   : > { %p1070_p4 = por %p1069_p7, %p1068_p8 }
  0xb0   : > { %p1066_p1 = pneg %p1065_p0 }
  0xb2   : > { %p1071_p5 = pnand %p1070_p4, %p1066_p1 }
  0xb4   : > { %1074 = shalt.err (!%p1071_p5)
}
  0xb5   : > { %794 = dma.vmem_to_hbm [thread:$0]  (%p1315_p9), %s1503_s11, 64, %s1513_s25, %s511_s16  }
  0xb6 PF: > { %s1649_s10 = sld [smem:[#allocation19_spill]]  ;;  %p818_p10 = scmp.ge.s32.totalorder %s1185_s28, 2 }
  0xb8   : > { %p811_p3 = pnand %p818_p10, %p1325_p13 }
  0xba   : > { %p812_p12 = pneg %p811_p3 }
  0xbc   : > { %s553_s15 = sand.u32 1, %s1649_s10  }
  0xbd   : > { %s554_s4 = scalar_lea.sflag [#allocation4], %s553_s15 }
  0xbe   : > { %1136 = dma.done.wait (%p812_p12), %s554_s4, 64  }
  0xbf   : > { %1138 = vsyncadd (%p812_p12), %s554_s4, 4294967232  ;;  %s563_s9 = scalar_lea.sflag [#allocation12], %s553_s15 }
  0xc0   : > { %1140 = dma.done.wait (%p812_p12), %s563_s9, 64  }
  0xc1   : > { %1142 = vsyncadd (%p812_p12), %s563_s9, 4294967232  ;;  %s31_s28 = sadd.s32 1, %s1185_s28   ;;  %s1651_s6 = sld [smem:[#allocation28_spill]] }
  0xc2   : > { %p28_p2 = scmp.ge.s32.totalorder %s31_s28, 6   ;;  %s1652_s24 = sld [smem:[#allocation22_spill]] }
  0xc3   : > { %s1653_s26 = sld [smem:[#allocation23_spill]]  ;;  %s1655_s18 = smov %s1149_s19 }
  0xc4   : > { %s1654_s11 = sld [smem:[#allocation24_spill]]  ;;  %s1656_s19 = smov %s1153_s20 }
  0xc5   : > { %s1657_s20 = smov %s1397_s7  ;;  %s1658_s21 = smov %s1161_s22 }
  0xc6   : > { %s1659_s22 = smov %s1165_s23  ;;  %s1661_s25 = smov %s1181_s27 }
  0xc7   : > { %s1660_s23 = smov %s1651_s6  ;;  %30 = sbr.rel (!%p28_p2) target bundleno = 19 (0x13), region = 147 }
  0xca   : > { %s1662_s27 = smov %s1654_s11 }
  0xcc   :  { %568 = vsyncpa [#allocation3], 1 }
  0xcd   :  { %570 = vsyncpa [#allocation3 + $0x1], 1 }
  0xce   :  { %571 = vsyncpa [#allocation6], 1 }
  0xcf   :  { %573 = vsyncpa [#allocation6 + $0x1], 1 }
  0xd0   :  { %574 = vsyncpa [#allocation9], 1 }
  0xd1   :  { %576 = vsyncpa [#allocation9 + $0x1], 1 }
  0xd2   :  { %577 = vsyncpa [#allocation4], 1 }
  0xd3   :  { %579 = vsyncpa [#allocation4 + $0x1], 1 }
  0xd4   :  { %580 = vsyncpa [#allocation12], 1 }
  0xd5   :  { %582 = vsyncpa [#allocation12 + $0x1], 1 }

</bundles_post_ra>
